<compile_context>
chip_gen: v7x
topology: tpu7x:2x2x1
jax: 0.10.0
libtpu: 0.0.40
codegen_flags: <defaults>
</compile_context>

<pallas_src>
import functools

import jax
import jax.numpy as jnp
from jax.experimental import pallas as pl
from jax.experimental.pallas import tpu as pltpu


def _mhp_head_kernel(x_ref, w_ref, b_ref, g_ref, cv_ref, g2t_ref, o_ref, *,
                     batch_block, n_keypoints):
    # x_ref  : (B, Cin, HW)  bf16  backbone features (spatial flattened)
    # w_ref  : (KD, Cin)     bf16  1x1 conv weight
    # b_ref  : (KD, 1)       f32   conv bias
    # g_ref  : (KD, K)       f32   one-hot: row k*D+d belongs to keypoint k
    # cv_ref : (HW, NC)      bf16  cols 0..2 = [ones, y-coord, z-coord], rest 0
    # g2t_ref: (2K, KD)      f32   rows 0..K-1 = g^T, rows K..2K-1 = (g*lin)^T
    # o_ref  : (B, K, 3)     f32   (x, y, z) per keypoint
    K = n_keypoints

    @pl.loop(0, batch_block)
    def _(bb):
        x = x_ref[bb]                                                # (Cin, HW)
        g = g_ref[...]                                               # (KD, K)

        # 1x1 conv as one MXU matmul: bf16 inputs, f32 accumulation.
        logits = jnp.dot(w_ref[...], x,
                         preferred_element_type=jnp.float32)         # (KD, HW)
        logits = logits + b_ref[...]

        # Numerically safe per-keypoint max shift (softmax over each
        # keypoint's D*H*W volume).  Row max = cheap lane reduction; the
        # per-keypoint combine only touches the tiny (KD, K) mask.
        row_max = jnp.max(logits, axis=1, keepdims=True)              # (KD, 1)
        kmax = jnp.max(jnp.where(g > 0.0, row_max, -jnp.inf),
                       axis=0, keepdims=True)                         # (1, K)
        shift = jnp.sum(g * kmax, axis=1, keepdims=True)              # (KD, 1)

        e = jnp.exp(logits - shift)                                   # (KD, HW) f32
        e16 = e.astype(jnp.bfloat16)

        # Fused soft-argmax reductions -> two matmuls:
        #   r1[:, 0] = per-row sum, r1[:, 1] = y-weighted, r1[:, 2] = z-weighted
        r1 = jnp.dot(e16, cv_ref[...],
                     preferred_element_type=jnp.float32)              # (KD, NC)
        #   r[k, 0] = denom, r[k, 1] = y_num, r[k, 2] = z_num, r[K+k, 0] = x_num
        r = jnp.dot(g2t_ref[...], r1,
                    preferred_element_type=jnp.float32)               # (2K, NC)

        denom = r[0:K, 0:1]                       # >= 1 thanks to the max shift
        inv = pl.reciprocal(denom, approx=False)  # exact; approx=True also fine
        o_ref[bb, :, 0:1] = r[K:2 * K, 0:1] * inv                     # x (depth)
        o_ref[bb, :, 1:2] = r[0:K, 1:2] * inv                         # y (height)
        o_ref[bb, :, 2:3] = r[0:K, 2:3] * inv                         # z (width)


def mobile_human_pose_head(feat_nchw, conv_w, conv_b, n_keypoints, *,
                           batch_block=None):
    """feat_nchw: (N, Cin, H, W), conv_w: (K*D, Cin, 1, 1), conv_b: (K*D,)
    Returns keypoints of shape (N, K, 3)."""
    N, Cin, H, W = feat_nchw.shape
    assert H == W, "Height and width of the backbone output must be equal"
    D = H
    K = n_keypoints
    KD = K * D
    assert conv_w.shape == (KD, Cin, 1, 1)
    HW = H * W
    NC = 128                       # lane-aligned width for the reduction matmul

    if batch_block is None:
        # Largest divisor of N that is <= 8 while keeping >= 2 grid steps
        # (so both v7x TensorCores get work); falls back to 1.
        batch_block = 1
        for cand in range(min(8, N), 1, -1):
            if N % cand == 0 and N // cand >= 2:
                batch_block = cand
                break
    B = batch_block
    assert N % B == 0, "batch_block must divide the batch size"

    # Glue: free reshapes + tiny constant matrices (no transpose over the big
    # feature map; weights/features fed to the kernel in bf16).
    x = feat_nchw.reshape(N, Cin, HW).astype(jnp.bfloat16)
    w = conv_w[:, :, 0, 0].astype(jnp.bfloat16)                       # (KD, Cin)
    bias_col = conv_b.reshape(KD, 1).astype(jnp.float32)              # (KD, 1)

    lin = jnp.linspace(0.0, 1.0, D, dtype=jnp.float32)
    col = jnp.arange(KD)
    g = (col[:, None] // D == jnp.arange(K)[None, :]).astype(jnp.float32)  # (KD, K)
    gx = g * lin[col % D][:, None]                                          # (KD, K)
    g2t = jnp.concatenate([g, gx], axis=1).T.astype(jnp.float32)            # (2K, KD)

    hw = jnp.arange(HW)
    cv = jnp.zeros((HW, NC), jnp.float32)
    cv = cv.at[:, 0].set(1.0)
    cv = cv.at[:, 1].set(lin[hw // W])        # y (height) coordinate per pixel
    cv = cv.at[:, 2].set(lin[hw % W])         # z (width) coordinate per pixel
    cv = cv.astype(jnp.bfloat16)

    kernel = functools.partial(_mhp_head_kernel, batch_block=B, n_keypoints=K)

    out = pl.pallas_call(
        kernel,
        out_shape=jax.ShapeDtypeStruct((N, K, 3), jnp.float32),
        grid_spec=pltpu.PrefetchScalarGridSpec(
            num_scalar_prefetch=0,
            grid=(N // B,),
            in_specs=[
                pl.BlockSpec((B, Cin, HW), lambda i: (i, 0, 0)),
                pl.BlockSpec((KD, Cin), lambda i: (0, 0)),
                pl.BlockSpec((KD, 1), lambda i: (0, 0)),
                pl.BlockSpec((KD, K), lambda i: (0, 0)),
                pl.BlockSpec((HW, NC), lambda i: (0, 0)),
                pl.BlockSpec((2 * K, KD), lambda i: (0, 0)),
            ],
            out_specs=pl.BlockSpec((B, K, 3), lambda i: (i, 0, 0)),
        ),
        compiler_params=pltpu.CompilerParams(
            dimension_semantics=("parallel",),
            vmem_limit_bytes=32 * 1024 * 1024,
        ),
    )(x, w, bias_col, g, cv, g2t)

    return out


def reference(feat_nchw, conv_w, conv_b, n_keypoints):
    """Pure-JAX mirror of the PyTorch forward (for a correctness check)."""
    N, Cin, H, W = feat_nchw.shape
    D = H
    K = n_keypoints
    out = (jnp.einsum('nchw,oc->nohw', feat_nchw, conv_w[:, :, 0, 0])
           + conv_b[None, :, None, None])                             # (N, K*D, H, W)
    hm = out.reshape(N, K, D * D * D)
    hm = jax.nn.softmax(hm, axis=-1).reshape(N, K, D, D, D)
    lin = jnp.linspace(0.0, 1.0, D)
    xp = hm.sum(axis=(-1, -2))
    yp = hm.sum(axis=(-1, -3))
    zp = hm.sum(axis=(-2, -3))
    xc = jnp.einsum('ijk,k->ij', xp, lin)
    yc = jnp.einsum('ijk,k->ij', yp, lin)
    zc = jnp.einsum('ijk,k->ij', zp, lin)
    return jnp.stack([xc, yc, zc], axis=-1)


if __name__ == "__main__":
    # Small shapes consistent with the module semantics:
    # real model: Cin=256, D=H=W=32, K=MobileHumanPoseSpec.n_keypoints, C_out=K*32.
    N, Cin, D, K = 2, 16, 16, 4
    KD = K * D

    key = jax.random.PRNGKey(0)
    k_feat, k_w, k_b = jax.random.split(key, 3)
    feat = jax.random.normal(k_feat, (N, Cin, D, D), dtype=jnp.float32)
    conv_w = 0.05 * jax.random.normal(k_w, (KD, Cin, 1, 1), dtype=jnp.float32)
    conv_b = 0.01 * jax.random.normal(k_b, (KD,), dtype=jnp.float32)

    keypoints = mobile_human_pose_head(feat, conv_w, conv_b, K)
    keypoints = jax.block_until_ready(keypoints)

    ref = jax.block_until_ready(reference(feat, conv_w, conv_b, K))
    assert keypoints.shape == (N, K, 3)
    max_err = float(jnp.max(jnp.abs(keypoints - ref)))
    assert max_err < 5e-3, f"mismatch vs reference: {max_err}"

    print("KERNEL_OK")
</pallas_src>

<mosaic_0001>
module attributes {stable_mosaic.version = 11 : i64} {
  func.func @_mhp_head_kernel(%arg0: i32, %arg1: memref<1x16x256xbf16, #tpu.memory_space<vmem>>, %arg2: memref<64x16xbf16, #tpu.memory_space<vmem>>, %arg3: memref<64x1xf32, #tpu.memory_space<vmem>>, %arg4: memref<64x4xf32, #tpu.memory_space<vmem>>, %arg5: memref<256x128xbf16, #tpu.memory_space<vmem>>, %arg6: memref<8x64xf32, #tpu.memory_space<vmem>>, %arg7: memref<1x4x3xf32, #tpu.memory_space<vmem>>) attributes {dimension_semantics = [#tpu.dimension_semantics<parallel>], iteration_bounds = array<i64: 2>, scalar_prefetch = 0 : i64, scratch_operands = 0 : i64, tpu.core_type = #tpu.core_type<tc>, window_params = [{transform_indices = @transform_0, window_bounds = array<i64: 1, 16, 256>}, {pipeline_mode = #tpu.pipeline_mode<synchronous>, transform_indices = @transform_1, window_bounds = array<i64: 64, 16>}, {pipeline_mode = #tpu.pipeline_mode<synchronous>, transform_indices = @transform_2, window_bounds = array<i64: 64, 1>}, {pipeline_mode = #tpu.pipeline_mode<synchronous>, transform_indices = @transform_3, window_bounds = array<i64: 64, 4>}, {pipeline_mode = #tpu.pipeline_mode<synchronous>, transform_indices = @transform_4, window_bounds = array<i64: 256, 128>}, {pipeline_mode = #tpu.pipeline_mode<synchronous>, transform_indices = @transform_5, window_bounds = array<i64: 8, 64>}, {transform_indices = @transform_6, window_bounds = array<i64: 1, 4, 3>}]} {
    %c0_i32 = arith.constant 0 : i32
    %c1_i32 = arith.constant 1 : i32
    %0 = arith.muli %c0_i32, %c1_i32 : i32
    %c0_i32_0 = arith.constant 0 : i32
    %1 = arith.addi %c0_i32_0, %0 : i32
    %2 = arith.index_cast %1 : i32 to index
    %c0 = arith.constant 0 : index
    %c0_1 = arith.constant 0 : index
    %3 = vector.load %arg1[%2, %c0, %c0_1] : memref<1x16x256xbf16, #tpu.memory_space<vmem>>, vector<1x16x256xbf16>
    %4 = vector.shape_cast %3 : vector<1x16x256xbf16> to vector<16x256xbf16>
    %c0_2 = arith.constant 0 : index
    %c0_3 = arith.constant 0 : index
    %5 = vector.load %arg4[%c0_2, %c0_3] : memref<64x4xf32, #tpu.memory_space<vmem>>, vector<64x4xf32>
    %c0_4 = arith.constant 0 : index
    %c0_5 = arith.constant 0 : index
    %6 = vector.load %arg2[%c0_4, %c0_5] : memref<64x16xbf16, #tpu.memory_space<vmem>>, vector<64x16xbf16>
    %cst = arith.constant dense<0.000000e+00> : vector<64x256xf32>
    %7 = tpu.matmul %6, %4, %cst {dimension_numbers = #tpu.dot_dimension_numbers<[1], [0], [0], [1], [0, 0, 1, 1], [], []>} : vector<64x16xbf16>, vector<16x256xbf16>, vector<64x256xf32> -> vector<64x256xf32>
    %c0_6 = arith.constant 0 : index
    %c0_7 = arith.constant 0 : index
    %8 = vector.load %arg3[%c0_6, %c0_7] : memref<64x1xf32, #tpu.memory_space<vmem>>, vector<64x1xf32>
    %9 = vector.broadcast %8 : vector<64x1xf32> to vector<64x256xf32>
    %10 = arith.addf %7, %9 : vector<64x256xf32>
    %cst_8 = arith.constant dense<0xFF800000> : vector<64xf32>
    %11 = vector.multi_reduction <maximumf>, %10, %cst_8 [1] : vector<64x256xf32> to vector<64xf32>
    %12 = vector.shape_cast %11 : vector<64xf32> to vector<64x1xf32>
    %cst_9 = arith.constant 0.000000e+00 : f32
    %13 = vector.broadcast %cst_9 : f32 to vector<64x4xf32>
    %14 = arith.cmpf ogt, %5, %13 : vector<64x4xf32>
    %cst_10 = arith.constant 0xFF800000 : f32
    %15 = vector.shape_cast %12 : vector<64x1xf32> to vector<64x1xf32>
    %16 = vector.broadcast %15 : vector<64x1xf32> to vector<64x4xf32>
    %17 = vector.broadcast %cst_10 : f32 to vector<64x4xf32>
    %18 = arith.select %14, %16, %17 : vector<64x4xi1>, vector<64x4xf32>
    %cst_11 = arith.constant dense<0xFF800000> : vector<4xf32>
    %19 = vector.multi_reduction <maximumf>, %18, %cst_11 [0] : vector<64x4xf32> to vector<4xf32>
    %20 = vector.shape_cast %19 : vector<4xf32> to vector<1x4xf32>
    %21 = vector.broadcast %20 : vector<1x4xf32> to vector<64x4xf32>
    %22 = arith.mulf %5, %21 : vector<64x4xf32>
    %cst_12 = arith.constant dense<0.000000e+00> : vector<64xf32>
    %23 = vector.multi_reduction <add>, %22, %cst_12 [1] : vector<64x4xf32> to vector<64xf32>
    %24 = vector.shape_cast %23 : vector<64xf32> to vector<64x1xf32>
    %25 = vector.broadcast %24 : vector<64x1xf32> to vector<64x256xf32>
    %26 = arith.subf %10, %25 : vector<64x256xf32>
    %27 = math.exp %26 : vector<64x256xf32>
    %28 = arith.truncf %27 : vector<64x256xf32> to vector<64x256xbf16>
    %c0_13 = arith.constant 0 : index
    %c0_14 = arith.constant 0 : index
    %29 = vector.load %arg5[%c0_13, %c0_14] : memref<256x128xbf16, #tpu.memory_space<vmem>>, vector<256x128xbf16>
    %cst_15 = arith.constant dense<0.000000e+00> : vector<64x128xf32>
    %30 = tpu.matmul %28, %29, %cst_15 {dimension_numbers = #tpu.dot_dimension_numbers<[1], [0], [0], [1], [0, 0, 1, 1], [], []>} : vector<64x256xbf16>, vector<256x128xbf16>, vector<64x128xf32> -> vector<64x128xf32>
    %c0_16 = arith.constant 0 : index
    %c0_17 = arith.constant 0 : index
    %31 = vector.load %arg6[%c0_16, %c0_17] : memref<8x64xf32, #tpu.memory_space<vmem>>, vector<8x64xf32>
    %cst_18 = arith.constant dense<0.000000e+00> : vector<8x128xf32>
    %32 = tpu.matmul %31, %30, %cst_18 {dimension_numbers = #tpu.dot_dimension_numbers<[1], [0], [0], [1], [0, 0, 1, 1], [], []>} : vector<8x64xf32>, vector<64x128xf32>, vector<8x128xf32> -> vector<8x128xf32>
    %33 = vector.extract_strided_slice %32 {offsets = [0, 0], sizes = [4, 1], strides = [1, 1]} : vector<8x128xf32> to vector<4x1xf32>
    %34 = tpu.reciprocal %33 : vector<4x1xf32> -> vector<4x1xf32>
    %35 = vector.extract_strided_slice %32 {offsets = [4, 0], sizes = [4, 1], strides = [1, 1]} : vector<8x128xf32> to vector<4x1xf32>
    %36 = arith.mulf %35, %34 : vector<4x1xf32>
    %37 = arith.index_cast %1 : i32 to index
    %c0_19 = arith.constant 0 : index
    %c0_20 = arith.constant 0 : index
    %38 = vector.load %arg7[%37, %c0_19, %c0_20] : memref<1x4x3xf32, #tpu.memory_space<vmem>>, vector<1x4x1xf32>
    %39 = vector.shape_cast %38 : vector<1x4x1xf32> to vector<4x1xf32>
    %40 = vector.shape_cast %36 : vector<4x1xf32> to vector<1x4x1xf32>
    tpu.vector_store %arg7[%37, %c0_19, %c0_20], %40 {strides = array<i32>} : memref<1x4x3xf32, #tpu.memory_space<vmem>>, vector<1x4x1xf32>,
    %41 = vector.extract_strided_slice %32 {offsets = [0, 1], sizes = [4, 1], strides = [1, 1]} : vector<8x128xf32> to vector<4x1xf32>
    %42 = arith.mulf %41, %34 : vector<4x1xf32>
    %43 = arith.index_cast %1 : i32 to index
    %c0_21 = arith.constant 0 : index
    %c1 = arith.constant 1 : index
    %44 = vector.load %arg7[%43, %c0_21, %c1] : memref<1x4x3xf32, #tpu.memory_space<vmem>>, vector<1x4x1xf32>
    %45 = vector.shape_cast %44 : vector<1x4x1xf32> to vector<4x1xf32>
    %46 = vector.shape_cast %42 : vector<4x1xf32> to vector<1x4x1xf32>
    tpu.vector_store %arg7[%43, %c0_21, %c1], %46 {strides = array<i32>} : memref<1x4x3xf32, #tpu.memory_space<vmem>>, vector<1x4x1xf32>,
    %47 = vector.extract_strided_slice %32 {offsets = [0, 2], sizes = [4, 1], strides = [1, 1]} : vector<8x128xf32> to vector<4x1xf32>
    %48 = arith.mulf %47, %34 : vector<4x1xf32>
    %49 = arith.index_cast %1 : i32 to index
    %c0_22 = arith.constant 0 : index
    %c2 = arith.constant 2 : index
    %50 = vector.load %arg7[%49, %c0_22, %c2] : memref<1x4x3xf32, #tpu.memory_space<vmem>>, vector<1x4x1xf32>
    %51 = vector.shape_cast %50 : vector<1x4x1xf32> to vector<4x1xf32>
    %52 = vector.shape_cast %48 : vector<4x1xf32> to vector<1x4x1xf32>
    tpu.vector_store %arg7[%49, %c0_22, %c2], %52 {strides = array<i32>} : memref<1x4x3xf32, #tpu.memory_space<vmem>>, vector<1x4x1xf32>,
    %c1_i32_23 = arith.constant 1 : i32
    return
  }
  func.func @transform_0(%arg0: i32) -> (i32, i32, i32) {
    %c0_i32 = arith.constant 0 : i32
    %c0_i32_0 = arith.constant 0 : i32
    %c0_i32_1 = arith.constant 0 : i32
    return %arg0, %c0_i32, %c0_i32_0 : i32, i32, i32
  }
  func.func @transform_1(%arg0: i32) -> (i32, i32) {
    %c0_i32 = arith.constant 0 : i32
    %c0_i32_0 = arith.constant 0 : i32
    %c0_i32_1 = arith.constant 0 : i32
    return %c0_i32, %c0_i32_0 : i32, i32
  }
  func.func @transform_2(%arg0: i32) -> (i32, i32) {
    %c0_i32 = arith.constant 0 : i32
    %c0_i32_0 = arith.constant 0 : i32
    %c0_i32_1 = arith.constant 0 : i32
    return %c0_i32, %c0_i32_0 : i32, i32
  }
  func.func @transform_3(%arg0: i32) -> (i32, i32) {
    %c0_i32 = arith.constant 0 : i32
    %c0_i32_0 = arith.constant 0 : i32
    %c0_i32_1 = arith.constant 0 : i32
    return %c0_i32, %c0_i32_0 : i32, i32
  }
  func.func @transform_4(%arg0: i32) -> (i32, i32) {
    %c0_i32 = arith.constant 0 : i32
    %c0_i32_0 = arith.constant 0 : i32
    %c0_i32_1 = arith.constant 0 : i32
    return %c0_i32, %c0_i32_0 : i32, i32
  }
  func.func @transform_5(%arg0: i32) -> (i32, i32) {
    %c0_i32 = arith.constant 0 : i32
    %c0_i32_0 = arith.constant 0 : i32
    %c0_i32_1 = arith.constant 0 : i32
    return %c0_i32, %c0_i32_0 : i32, i32
  }
  func.func @transform_6(%arg0: i32) -> (i32, i32, i32) {
    %c0_i32 = arith.constant 0 : i32
    %c0_i32_0 = arith.constant 0 : i32
    %c0_i32_1 = arith.constant 0 : i32
    return %arg0, %c0_i32, %c0_i32_0 : i32, i32, i32
  }
}

</mosaic_0001>

<bundles_post_ra>
// kernel: tpu_custom_call.1
= control target key start
LH: loop header
LB: loop body
LE: loop exit
PB: predicated region body
PF: predicated region fallthrough
CT: control target
= control target key end

     0   :  { %s1163_s21 = smov 0   ;;  %s1379_s0 = inlined_call_operand.vmem [shape: bf16[2,16,256], index: 0, kind: input, shape index: {}]   ;;  %s1380_s1 = inlined_call_operand.vmem [shape: bf16[64,16], index: 1, kind: input, shape index: {}]   ;;  %s1381_s2 = inlined_call_operand.vmem [shape: f32[64,1], index: 2, kind: input, shape index: {}]   ;;  %s1382_s3 = inlined_call_operand.vmem [shape: f32[64,4], index: 3, kind: input, shape index: {}]   ;;  %s1383_s4 = inlined_call_operand.vmem [shape: bf16[256,128], index: 4, kind: input, shape index: {}]   ;;  %s1384_s5 = inlined_call_operand.vmem [shape: f32[8,64], index: 5, kind: input, shape index: {}]   ;;  %s1385_s6 = inlined_call_operand.vmem [shape: f32[2,4,3], index: 6, kind: output, shape index: {}]  }
   0x1 LB: > { %s923_s22 = sadd.s32 4294967295, %s1120_s21   ;;  %p927_p0 = scmp.ge.s32.totalorder %s1120_s21, 1  ;;  %s1120_s21 = sphi %s1163_s21, %s16_s21  }
   0x2   : > { %p212_p1 = scmp.lt.s32.totalorder %s1120_s21, 3 }
   0x4   : > { %p213_p2 = pnand %p927_p0, %p212_p1 }
   0x5   : > { %p241_p3 = scmp.lt.s32.totalorder (!%p213_p2), %s923_s22, 1  ;;  %v1122_v0 = vmov (!%p213_p2), 0   ;;  %v269_v1 = vld [vmem:[%s1381_s2] sm:$0xff] (!%p213_p2)  ;;  %v270_v2 = vld [vmem:[%s1381_s2 + $0x8] sm:$0xff] (!%p213_p2)  ;;  %v271_v3 = vld [vmem:[%s1381_s2 + $0x10] sm:$0xff] (!%p213_p2)  ;;  %vm347_vm0 = vcmask (!%p213_p2), 130048  }
   0x6   : > { %216 = sbr.rel (%p213_p2) target bundleno = 1180 (0x49c), region = 44  ;;  %392 = vmatprep.mubr.bf16.mxu0 (!%p213_p2), %v1122_v0  ;;  %1055 = vset.pattern.permute.xlu0 (!%p213_p2), %v1122_v0  ;;  %v1060_v6 = vld [vmem:[%s1380_s1] sm:$0xff] (!%p213_p2)   ;;  %v272_v7 = vld [vmem:[%s1381_s2 + $0x18] sm:$0xff] (!%p213_p2)  ;;  %v274_v9 = vld [vmem:[%s1381_s2 + $0x28] sm:$0xff] (!%p213_p2)  ;;  %vm473_vm8 = vcmask (!%p213_p2), 31744   ;;  %vm1124_vm10 = vmmov (!%p213_p2), 0  }
   0x7   : > { %1056 = vset.pattern.permute.xlu1 (!%p213_p2), %v1122_v0  ;;  %279 = vperm.xlu0 (!%p213_p2), %1055, %v269_v1   ;;  %v273_v8 = vld [vmem:[%s1381_s2 + $0x20] sm:$0xff] (!%p213_p2)  ;;  %v275_v10 = vld [vmem:[%s1381_s2 + $0x30] sm:$0xff] (!%p213_p2)  ;;  %v276_v11 = vld [vmem:[%s1381_s2 + $0x38] sm:$0xff] (!%p213_p2)  ;;  %vm777_vm11 = vcmask (!%p213_p2), 523264   ;;  %s1126_s12 = smov (!%p213_p2), 2   ;;  %s1127_s13 = smov (!%p213_p2), 1  }
   0x8   : > { %289 = vperm.xlu1 (!%p213_p2), %1056, %v271_v3   ;;  %v1061_v12 = vld [vmem:[%s1380_s1 + $0x8] sm:$0xff] (!%p213_p2)   ;;  %v1062_v13 = vld [vmem:[%s1380_s1 + $0x10] sm:$0xff] (!%p213_p2)   ;;  %v1063_v14 = vld [vmem:[%s1380_s1 + $0x18] sm:$0xff] (!%p213_p2)   ;;  %vm856_vm12 = vcmask (!%p213_p2), 7172   ;;  %vm862_vm13 = vcmask (!%p213_p2), 11272   ;;  %vm868_vm14 = vcmask (!%p213_p2), 19472  }
   0x9   : > { %v1064_v63 = vld [vmem:[%s1383_s4 + $0x40] sm:$0xff] (!%p213_p2)   ;;  %v1066_v1 = vld [vmem:[%s1383_s4 + $0x48] sm:$0xff] (!%p213_p2)   ;;  %v1068_v3 = vld [vmem:[%s1383_s4 + $0x50] sm:$0xff] (!%p213_p2)  }
   0xa   : > { %961 = vmatprep.subr.bf16.mxu1 (!%p213_p2), %v1064_v63 }
   0xb   : > { %284 = vperm.xlu0 (!%p213_p2), %1055, %v270_v2   ;;  %v1067_v2 = vld [vmem:[%s1383_s4 + $0x8] sm:$0xff] (!%p213_p2)  }
   0xc   : > { %294 = vperm.xlu1 (!%p213_p2), %1056, %v272_v7  }
   0xd   : > { %s1387_s22 = smov (!%p241_p3, %s923_s22), 1 }
   0xe   : > { %s960_s23 = sshll.u32 %s1387_s22, 4  ;;  %s930_s11 = sshll.u32 %s1387_s22, 2 }
   0xf   : > { %s245_s28 = scalar_lea.vmem %s1379_s0, %s960_s23  ;;  %299 = vperm.xlu0 %1055, %v273_v8   ;;  %s249_s16 = scalar_lea.vmem %s1385_s6, %s930_s11 }
  0x10   : > { %v1057_v4 = vld [vmem:[%s245_s28 + $0x4] ss:$8 sps:$4 sm:$0xff]   ;;  %v1059_v5 = vld [vmem:[%s245_s28] ss:$8 sps:$4 sm:$0xff]   ;;  %304 = vperm.xlu1 %1056, %v274_v9  }
  0x11   : > { %360 = vmatprep.subr.bf16.mxu0 %v1057_v4  ;;  %v1069_v4 = vld [vmem:[%s1383_s4 + $0x10] sm:$0xff]  }
  0x12   : > { %361 = vmatpush1.bf16.msra.mxu0 %v1059_v5  ;;  %v1070_v5 = vld [vmem:[%s1383_s4 + $0x58] sm:$0xff]  }
  0x13   : > { %309 = vperm.xlu0 %1055, %v275_v10   ;;  %v258_v10 = vld [vmem:[%s1382_s3 + $0x28] sm:$0xff] }
  0x14   : > { %314 = vperm.xlu1 %1056, %v276_v11   ;;  %vm462_vm1 = vcmp.gt.f32.partialorder %v258_v10, 0.0 }
  0x15   : > { %937 = vmatmul.mubr.msk.bf16.vlgmr.msra.gmra.mrb[0].mxu0 %vm347_vm0, %v1060_v6  ;;  %v1071_v6 = vld [vmem:[%s1383_s4 + $0x18] sm:$0xff]  }
  0x16   : > { %402 = vmatprep.mubr.bf16.mxu0 %v1122_v0 }
  0x1d   : > { %938 = vmatmul.mubr.msk.bf16.gmra.mrb[4].mxu0 %vm347_vm0, %v1061_v12  ;;  %v254_v12 = vld [vmem:[%s1382_s3 + $0x8] sm:$0xff] }
  0x1e   : > { %412 = vmatprep.mubr.bf16.mxu0 %v1122_v0  ;;  %vm458_vm2 = vcmp.gt.f32.partialorder %v254_v12, 0.0 }
  0x25   : > { %939 = vmatmul.mubr.msk.bf16.gmra.mrb[8].mxu0 %vm347_vm0, %v1062_v13  ;;  %v257_v13 = vld [vmem:[%s1382_s3 + $0x20] sm:$0xff] }
  0x26   : > { %422 = vmatprep.mubr.bf16.mxu0 %v1122_v0  ;;  %v1065_v0 = vld [vmem:[%s1383_s4] sm:$0xff]   ;;  %vm461_vm3 = vcmp.gt.f32.partialorder %v257_v13, 0.0 }
  0x27   : > { %962 = vmatpush3.bf16.msra.mxu1 %v1065_v0 }
  0x28   : > { %963 = vmatprep.subr.bf16.mxu1 %v1066_v1 }
  0x2b   : > { %964 = vmatpush3.bf16.msra.mxu1 %v1067_v2 }
  0x2c   : > { %965 = vmatprep.subr.bf16.mxu1 %v1068_v3 }
  0x2d   : > { %940 = vmatmul.mubr.msk.bf16.gmra.mrb[12].mxu0 %vm347_vm0, %v1063_v14  ;;  %v253_v14 = vld [vmem:[%s1382_s3] sm:$0xff] }
  0x2e   : > { %vm457_vm4 = vcmp.gt.f32.partialorder %v253_v14, 0.0 }
  0x2f   : > { %966 = vmatpush3.bf16.msra.mxu1 %v1069_v4 }
  0x30   : > { %967 = vmatprep.subr.bf16.mxu1 %v1070_v5 }
  0x33   : > { %968 = vmatpush3.bf16.msra.mxu1 %v1071_v6 }
  0x86   : > { %v280_v15 = vpop.permute.xlu0 %279 }
  0x87   : > { %v290_v26 = vpop.permute.xlu1 %289 }
  0x8a   : > { %v285_v17 = vpop.permute.xlu0 %284 }
  0x8b   : > { %v295_v33 = vpop.permute.xlu1 %294 }
  0x8e   : > { %v300_v38 = vpop.permute.xlu0 %299 }
  0x8f   : > { %v305_v43 = vpop.permute.xlu1 %304 }
  0x92   : > { %v310_v51 = vpop.permute.xlu0 %309 }
  0x93   : > { %v315_v55 = vpop.permute.xlu1 %314 }
  0xe8   : > { %v394_v16 = vpop.f32.mrb[0].mxu0 }
  0xe9   : > { %v1217_v18 = vadd.f32 %v394_v16, %v280_v15  ;;  %v396_v19 = vpop.f32.mrb[1].mxu0  ;;  %v255_v16 = vld [vmem:[%s1382_s3 + $0x10] sm:$0xff] }
  0xea   : > { %v1219_v20 = vadd.f32 %v396_v19, %v280_v15  ;;  %v398_v21 = vpop.f32.mrb[2].mxu0  ;;  %v259_v19 = vld [vmem:[%s1382_s3 + $0x30] sm:$0xff]  ;;  %vm459_vm5 = vcmp.gt.f32.partialorder %v255_v16, 0.0 }
  0xeb   : > { %v1221_v22 = vadd.f32 %v398_v21, %v285_v17  ;;  %v400_v23 = vpop.f32.mrb[3].mxu0  ;;  %vm463_vm7 = vcmp.gt.f32.partialorder %v259_v19, 0.0 }
  0xec   : > { %v1223_v24 = vadd.f32 %v400_v23, %v285_v17  ;;  %v433_v25 = vmax.f32 %v1217_v18, %v1219_v20  ;;  %v256_v17 = vld [vmem:[%s1382_s3 + $0x18] sm:$0xff] }
  0xed   : > { %vm460_vm6 = vcmp.gt.f32.partialorder %v256_v17, 0.0 }
  0xee   : > { %434 = vmax.xlane.f32.xlu0 %v433_v25  ;;  %v436_v27 = vmax.f32 %v1221_v22, %v1223_v24  ;;  %v260_v25 = vld [vmem:[%s1382_s3 + $0x38] sm:$0xff] }
  0xef   : > { %vm464_vm9 = vcmp.gt.f32.partialorder %v260_v25, 0.0 }
  0xf0   : > { %v404_v28 = vpop.f32.mrb[4].mxu0  ;;  %437 = vmax.xlane.f32.xlu1 %v436_v27 }
  0xf1   : > { %v1229_v29 = vadd.f32 %v404_v28, %v290_v26  ;;  %v406_v30 = vpop.f32.mrb[5].mxu0 }
  0xf2   : > { %v1231_v31 = vadd.f32 %v406_v30, %v290_v26  ;;  %v408_v32 = vpop.f32.mrb[6].mxu0 }
  0xf3   : > { %v410_v34 = vpop.f32.mrb[7].mxu0  ;;  %v1233_v35 = vadd.f32 %v408_v32, %v295_v33 }
  0xf4   : > { %v1235_v36 = vadd.f32 %v410_v34, %v295_v33  ;;  %v439_v37 = vmax.f32 %v1229_v29, %v1231_v31 }
  0xf6   : > { %440 = vmax.xlane.f32.xlu0 %v439_v37  ;;  %v442_v40 = vmax.f32 %v1233_v35, %v1235_v36 }
  0xf8   : > { %v414_v39 = vpop.f32.mrb[8].mxu0 }
  0xf9   : > { %v1241_v41 = vadd.f32 %v414_v39, %v300_v38  ;;  %v416_v42 = vpop.f32.mrb[9].mxu0 }
  0xfa   : > { %v1243_v44 = vadd.f32 %v416_v42, %v300_v38  ;;  %v418_v45 = vpop.f32.mrb[10].mxu0  ;;  %443 = vmax.xlane.f32.xlu0 %v442_v40 }
  0xfb   : > { %v1245_v46 = vadd.f32 %v418_v45, %v305_v43  ;;  %v420_v47 = vpop.f32.mrb[11].mxu0 }
  0xfc   : > { %v1247_v48 = vadd.f32 %v420_v47, %v305_v43  ;;  %v445_v49 = vmax.f32 %v1241_v41, %v1243_v44 }
  0xfe   : > { %446 = vmax.xlane.f32.xlu1 %v445_v49  ;;  %v448_v50 = vmax.f32 %v1245_v46, %v1247_v48 }
 0x100   : > { %v424_v52 = vpop.f32.mrb[12].mxu0  ;;  %449 = vmax.xlane.f32.xlu0 %v448_v50 }
 0x101   : > { %v1253_v53 = vadd.f32 %v424_v52, %v310_v51  ;;  %v426_v54 = vpop.f32.mrb[13].mxu0 }
 0x102   : > { %v1255_v56 = vadd.f32 %v426_v54, %v310_v51  ;;  %v428_v57 = vpop.f32.mrb[14].mxu0 }
 0x103   : > { %v1257_v58 = vadd.f32 %v428_v57, %v315_v55  ;;  %v430_v59 = vpop.f32.mrb[15].mxu0 }
 0x104   : > { %v1259_v60 = vadd.f32 %v430_v59, %v315_v55  ;;  %v451_v61 = vmax.f32 %v1253_v53, %v1255_v56 }
 0x106   : > { %452 = vmax.xlane.f32.xlu1 %v451_v61  ;;  %v454_v62 = vmax.f32 %v1257_v58, %v1259_v60 }
 0x108   : > { %455 = vmax.xlane.f32.xlu0 %v454_v62 }
 0x17b   : > { %v435_v7 = vpop.xlane.xlu0 %434 }
 0x17c   : > { %v465_v32 = vsel %vm457_vm4, %v435_v7, -inf }
 0x17d   : > { %v438_v11 = vpop.xlane.xlu1 %437  ;;  %v474_v47 = vsel %vm473_vm8, %v465_v32, -inf  ;;  %v1078_v32 = vld [vmem:[%s1383_s4 + $0x78] sm:$0xff]  }
 0x17e   : > { %v466_v26 = vsel %vm458_vm2, %v438_v11, -inf }
 0x17f   : > { %v475_v38 = vsel %vm473_vm8, %v466_v26, -inf }
 0x183   : > { %v441_v8 = vpop.xlane.xlu0 %440 }
 0x184   : > { %v467_v33 = vsel %vm459_vm5, %v441_v8, -inf }
 0x185   : > { %v476_v49 = vsel %vm473_vm8, %v467_v33, -inf  ;;  %v1079_v33 = vld [vmem:[%s1383_s4 + $0x38] sm:$0xff]  }
 0x187   : > { %v444_v9 = vpop.xlane.xlu0 %443 }
 0x188   : > { %v468_v34 = vsel %vm460_vm6, %v444_v9, -inf }
 0x189   : > { %v477_v50 = vsel %vm473_vm8, %v468_v34, -inf }
 0x18b   : > { %v447_v21 = vpop.xlane.xlu1 %446 }
 0x18c   : > { %v469_v27 = vsel %vm461_vm3, %v447_v21, -inf }
 0x18d   : > { %v450_v15 = vpop.xlane.xlu0 %449  ;;  %v478_v39 = vsel %vm473_vm8, %v469_v27, -inf }
 0x18e   : > { %v470_v23 = vsel %vm462_vm1, %v450_v15, -inf  ;;  %v479_v52 = vmax.f32 %v474_v47, %v478_v39 }
 0x18f   : > { %v480_v28 = vsel %vm473_vm8, %v470_v23, -inf }
 0x190   : > { %v481_v43 = vmax.f32 %v475_v38, %v480_v28  ;;  %v1076_v28 = vld [vmem:[%s1383_s4 + $0x70] sm:$0xff]  }
 0x192   : > { %v486_v57 = vmax.f32 %v479_v52, %v481_v43 }
 0x193   : > { %v453_v30 = vpop.xlane.xlu1 %452 }
 0x194   : > { %v471_v37 = vsel %vm463_vm7, %v453_v30, -inf  ;;  %v1077_v30 = vld [vmem:[%s1383_s4 + $0x30] sm:$0xff]  }
 0x195   : > { %v482_v40 = vsel %vm473_vm8, %v471_v37, -inf  ;;  %v456_v42 = vpop.xlane.xlu0 %455 }
 0x196   : > { %v472_v45 = vsel %vm464_vm9, %v456_v42, -inf  ;;  %v483_v54 = vmax.f32 %v476_v49, %v482_v40 }
 0x197   : > { %v484_v51 = vsel %vm473_vm8, %v472_v45, -inf }
 0x198   : > { %v485_v55 = vmax.f32 %v477_v50, %v484_v51 }
 0x19a   : > { %v487_v59 = vmax.f32 %v483_v54, %v485_v55 }
 0x19c   : > { %v488_v61 = vmax.f32 %v486_v57, %v487_v59 }
 0x19e   : > { %v489_v62 = vrot.slane %v488_v61, 4 }
 0x1a0   : > { %v490_v63 = vmax.f32 %v488_v61, %v489_v62 }
 0x1a2   : > { %v491_v0 = vrot.slane %v490_v63, 2 }
 0x1a4   : > { %v492_v1 = vmax.f32 %v490_v63, %v491_v0 }
 0x1a6   : > { %v493_v2 = vrot.slane %v492_v1, 1 }
 0x1a8   : > { %v494_v3 = vmax.f32 %v492_v1, %v493_v2 }
 0x1aa   : > { %v496_v4 = vmul.f32 %v494_v3, %v254_v12  ;;  %v495_v5 = vmul.f32 %v494_v3, %v253_v14  ;;  %v498_v8 = vmul.f32 %v494_v3, %v256_v17  ;;  %v497_v9 = vmul.f32 %v494_v3, %v255_v16 }
 0x1ab   : > { %v500_v21 = vmul.f32 %v494_v3, %v258_v10  ;;  %v499_v23 = vmul.f32 %v494_v3, %v257_v13  ;;  %v502_v14 = vmul.f32 %v494_v3, %v260_v25  ;;  %v501_v27 = vmul.f32 %v494_v3, %v259_v19  ;;  %v1072_v10 = vld [vmem:[%s1383_s4 + $0x60] sm:$0xff]   ;;  %v1074_v19 = vld [vmem:[%s1383_s4 + $0x68] sm:$0xff]  }
 0x1ac   : > { %v506_v6 = vsel %vm473_vm8, %v496_v4, 0.0  ;;  %v503_v7 = vsel %vm473_vm8, %v495_v5, 0.0  ;;  %v512_v11 = vsel %vm473_vm8, %v498_v8, 0.0  ;;  %v509_v15 = vsel %vm473_vm8, %v497_v9, 0.0  ;;  %v1073_v13 = vld [vmem:[%s1383_s4 + $0x20] sm:$0xff]   ;;  %969 = vmatprep.subr.bf16.mxu1 %v1072_v10  ;;  %v1075_v25 = vld [vmem:[%s1383_s4 + $0x28] sm:$0xff]  }
 0x1ad   : > { %507 = vadd.xlane.f32.xlu0 %v506_v6  ;;  %504 = vadd.xlane.f32.xlu1 %v503_v7  ;;  %v518_v26 = vsel %vm473_vm8, %v500_v21, 0.0  ;;  %v515_v12 = vsel %vm473_vm8, %v499_v23, 0.0  ;;  %v524_v16 = vsel %vm473_vm8, %v502_v14, 0.0  ;;  %v521_v17 = vsel %vm473_vm8, %v501_v27, 0.0 }
 0x1ae   : > { %970 = vmatpush3.bf16.msra.mxu1 %v1073_v13 }
 0x1af   : > { %971 = vmatprep.subr.bf16.mxu1 %v1074_v19 }
 0x1b1   : > { %513 = vadd.xlane.f32.xlu0 %v512_v11  ;;  %510 = vadd.xlane.f32.xlu1 %v509_v15 }
 0x1b2   : > { %972 = vmatpush3.bf16.msra.mxu1 %v1075_v25 }
 0x1b3   : > { %973 = vmatprep.subr.bf16.mxu1 %v1076_v28 }
 0x1b5   : > { %519 = vadd.xlane.f32.xlu0 %v518_v26  ;;  %516 = vadd.xlane.f32.xlu1 %v515_v12 }
 0x1b6   : > { %974 = vmatpush3.bf16.msra.mxu1 %v1077_v30 }
 0x1b7   : > { %975 = vmatprep.subr.bf16.mxu1 %v1078_v32 }
 0x1b9   : > { %525 = vadd.xlane.f32.xlu0 %v524_v16  ;;  %522 = vadd.xlane.f32.xlu1 %v521_v17 }
 0x1ba   : > { %976 = vmatpush3.bf16.msra.mxu1 %v1079_v33 }
 0x23a   : > { %v508_v34 = vpop.xlane.xlu0 %507  ;;  %v505_v37 = vpop.xlane.xlu1 %504 }
 0x23b   : > { %v529_v38 = vsub.f32 %v1221_v22, %v508_v34  ;;  %v530_v39 = vsub.f32 %v1223_v24, %v508_v34  ;;  %v527_v40 = vsub.f32 %v1217_v18, %v505_v37  ;;  %v528_v42 = vsub.f32 %v1219_v20, %v505_v37 }
 0x23c   : > { %v1123_v34 = vmov 0.0|0.0   ;;  %v1125_v37 = vmov 0.0  }
 0x23d   : > { %v547_v43 = vmul.f32 1.442695, %v529_v38  ;;  %v549_v45 = vmul.f32 1.442695, %v530_v39  ;;  %v543_v47 = vmul.f32 1.442695, %v527_v40  ;;  %1029 = vmatprep.subr.bf16.mxu0 %v1123_v34  ;;  %1026 = vmatprep.mubr.msk.f32.mxu0 %vm1124_vm10, %v1125_v37 }
 0x23e   : > { %v545_v49 = vmul.f32 1.442695, %v528_v42  ;;  %v514_v50 = vpop.xlane.xlu0 %513  ;;  %v511_v51 = vpop.xlane.xlu1 %510 }
 0x23f   : > { %1080 = vpow2.f32 %v547_v43  ;;  %v533_v52 = vsub.f32 %v1233_v35, %v514_v50  ;;  %v534_v54 = vsub.f32 %v1235_v36, %v514_v50  ;;  %v531_v22 = vsub.f32 %v1229_v29, %v511_v51 }
 0x240   : > { %1082 = vpow2.f32 %v549_v45  ;;  %v532_v24 = vsub.f32 %v1231_v31, %v511_v51 }
 0x241   : > { %1084 = vpow2.f32 %v543_v47  ;;  %v557_v18 = vmul.f32 1.442695, %v534_v54  ;;  %v555_v59 = vmul.f32 1.442695, %v533_v52  ;;  %v551_v62 = vmul.f32 1.442695, %v531_v22 }
 0x242   : > { %1086 = vpow2.f32 %v545_v49  ;;  %v553_v20 = vmul.f32 1.442695, %v532_v24  ;;  %v520_v55 = vpop.xlane.xlu0 %519  ;;  %v517_v57 = vpop.xlane.xlu1 %516 }
 0x243   : > { %v538_v61 = vsub.f32 %v1247_v48, %v520_v55  ;;  %1088 = vpow2.f32 %v557_v18  ;;  %v536_v35 = vsub.f32 %v1243_v44, %v517_v57  ;;  %v537_v29 = vsub.f32 %v1245_v46, %v520_v55 }
 0x244   : > { %1090 = vpow2.f32 %v553_v20  ;;  %v535_v1 = vsub.f32 %v1241_v41, %v517_v57 }
 0x245   : > { %v565_v63 = vmul.f32 1.442695, %v538_v61  ;;  %v561_v36 = vmul.f32 1.442695, %v536_v35  ;;  %1092 = vpow2.f32 %v555_v59  ;;  %v563_v5 = vmul.f32 1.442695, %v537_v29 }
 0x246   : > { %v526_v0 = vpop.xlane.xlu0 %525  ;;  %v523_v31 = vpop.xlane.xlu1 %522  ;;  %1094 = vpow2.f32 %v551_v62  ;;  %v559_v7 = vmul.f32 1.442695, %v535_v1 }
 0x247   : > { %1096 = vpow2.f32 %v565_v63  ;;  %v542_v3 = vsub.f32 %v1259_v60, %v526_v0  ;;  %v540_v4 = vsub.f32 %v1255_v56, %v523_v31  ;;  %v541_v21 = vsub.f32 %v1257_v58, %v526_v0 }
 0x248   : > { %1098 = vpow2.f32 %v561_v36  ;;  %v539_v56 = vsub.f32 %v1253_v53, %v523_v31 }
 0x249   : > { %v1081_v2 = vpop.eup %1080  ;;  %v573_v9 = vmul.f32 1.442695, %v542_v3  ;;  %v569_v15 = vmul.f32 1.442695, %v540_v4  ;;  %1100 = vpow2.f32 %v563_v5  ;;  %v571_v27 = vmul.f32 1.442695, %v541_v21 }
 0x24a   : > { %v1083_v48 = vpop.eup %1082  ;;  %1102 = vpow2.f32 %v559_v7  ;;  %v567_v16 = vmul.f32 1.442695, %v539_v56 }
 0x24b   : > { %v1085_v44 = vpop.eup %1084  ;;  %1104 = vpow2.f32 %v573_v9 }
 0x24c   : > { %v1087_v6 = vpop.eup %1086  ;;  %v575_v8 = vpack.c.bf16 %v1081_v2, %v1085_v44  ;;  %1106 = vpow2.f32 %v569_v15  ;;  %v776_v2 = vld [vmem:[%s1384_s5] sm:$0xff] }
 0x24d   : > { %v576_v11 = vpack.c.bf16 %v1083_v48, %v1087_v6  ;;  %v1089_v46 = vpop.eup %1088  ;;  %1108 = vpow2.f32 %v571_v27 }
 0x24e   : > { %v1091_v41 = vpop.eup %1090  ;;  %1110 = vpow2.f32 %v567_v16 }
 0x24f   : > { %743 = vmatprep.mubr.bf16.mxu1 %v576_v11  ;;  %v1093_v60 = vpop.eup %1092  ;;  %v578_v23 = vpack.c.bf16 %v1089_v46, %v1091_v41 }
 0x250   : > { %744 = vmatmul.mubr.bf16.vlgmr.msra.gmra.mrb[0].mxu1 %v575_v8  ;;  %v1095_v26 = vpop.eup %1094 }
 0x251   : > { %v1097_v12 = vpop.eup %1096  ;;  %751 = vmatprep.mubr.bf16.mxu1 %v578_v23  ;;  %v577_v17 = vpack.c.bf16 %v1093_v60, %v1095_v26 }
 0x252   : > { %v1099_v14 = vpop.eup %1098 }
 0x253   : > { %v580_v10 = vpack.c.bf16 %v1097_v12, %v1099_v14  ;;  %v1101_v13 = vpop.eup %1100 }
 0x254   : > { %v1103_v58 = vpop.eup %1102 }
 0x255   : > { %v1105_v19 = vpop.eup %1104  ;;  %v579_v28 = vpack.c.bf16 %v1101_v13, %v1103_v58 }
 0x256   : > { %v1107_v25 = vpop.eup %1106 }
 0x257   : > { %v582_v53 = vpack.c.bf16 %v1105_v19, %v1107_v25  ;;  %v1109_v30 = vpop.eup %1108 }
 0x258   : > { %752 = vmatmul.mubr.bf16.gmra.mrb[4].mxu1 %v577_v17  ;;  %v1111_v32 = vpop.eup %1110 }
 0x259   : > { %759 = vmatprep.mubr.bf16.mxu1 %v580_v10  ;;  %v581_v33 = vpack.c.bf16 %v1109_v30, %v1111_v32 }
 0x260   : > { %760 = vmatmul.mubr.bf16.gmra.mrb[8].mxu1 %v579_v28 }
 0x261   : > { %767 = vmatprep.mubr.bf16.mxu1 %v582_v53 }
 0x268   : > { %768 = vmatmul.mubr.bf16.gmra.mrb[12].mxu1 %v581_v33 }
 0x323   : > { %v977_v38 = vpop.f32.mrb[0].mxu1 }
 0x324   : > { %v978_v39 = vpop.f32.mrb[1].mxu1 }
 0x325   : > { %v979_v40 = vadd.f32 %v978_v39, %v977_v38  ;;  %v980_v42 = vpop.f32.mrb[2].mxu1 }
 0x326   : > { %v981_v43 = vpop.f32.mrb[3].mxu1 }
 0x327   : > { %v982_v45 = vadd.f32 %v981_v43, %v980_v42 }
 0x329   : > { %v1030_v47 = vpack.c.bf16 %v982_v45, %v979_v40 }
 0x32b   : > { %v983_v49 = vpop.f32.mrb[4].mxu1  ;;  %1031 = vmatpush3.bf16.msra.mxu0 %v1030_v47 }
 0x32c   : > { %v984_v50 = vpop.f32.mrb[5].mxu1  ;;  %1032 = vmatprep.subr.bf16.mxu0 %v1123_v34 }
 0x32d   : > { %v985_v51 = vadd.f32 %v984_v50, %v983_v49  ;;  %v986_v52 = vpop.f32.mrb[6].mxu1 }
 0x32e   : > { %v987_v54 = vpop.f32.mrb[7].mxu1 }
 0x32f   : > { %v988_v22 = vadd.f32 %v987_v54, %v986_v52 }
 0x331   : > { %v1033_v24 = vpack.c.bf16 %v988_v22, %v985_v51 }
 0x333   : > { %v989_v18 = vpop.f32.mrb[8].mxu1  ;;  %1034 = vmatpush3.bf16.msra.mxu0 %v1033_v24 }
 0x334   : > { %v990_v20 = vpop.f32.mrb[9].mxu1  ;;  %1035 = vmatprep.subr.bf16.mxu0 %v1123_v34 }
 0x335   : > { %v991_v55 = vadd.f32 %v990_v20, %v989_v18  ;;  %v992_v57 = vpop.f32.mrb[10].mxu1 }
 0x336   : > { %v993_v59 = vpop.f32.mrb[11].mxu1 }
 0x337   : > { %v994_v61 = vadd.f32 %v993_v59, %v992_v57 }
 0x339   : > { %v1036_v62 = vpack.c.bf16 %v994_v61, %v991_v55 }
 0x33b   : > { %v995_v35 = vpop.f32.mrb[12].mxu1  ;;  %1037 = vmatpush3.bf16.msra.mxu0 %v1036_v62 }
 0x33c   : > { %v996_v63 = vpop.f32.mrb[13].mxu1  ;;  %1038 = vmatprep.subr.bf16.mxu0 %v1123_v34 }
 0x33d   : > { %v997_v36 = vadd.f32 %v996_v63, %v995_v35  ;;  %v998_v0 = vpop.f32.mrb[14].mxu1 }
 0x33e   : > { %v999_v29 = vpop.f32.mrb[15].mxu1 }
 0x33f   : > { %v1000_v31 = vadd.f32 %v999_v29, %v998_v0 }
 0x341   : > { %v1039_v1 = vpack.c.bf16 %v1000_v31, %v997_v36 }
 0x343   : > { %1040 = vmatpush3.bf16.msra.mxu0 %v1039_v1 }
 0x346   : > { %1027 = vmatmul.mubr.msk.f32.vlgmr.msra.gmra.mrb[16].mxu0 %vm777_vm11, %v776_v2 }
 0x419   : > { %v847_v3 = vpop.f32.mrb[16].mxu0 }
 0x41a   : > { %1112 = vrcp.f32 %v847_v3  ;;  %v1028_v48 = vpop.f32.mrb[17].mxu0 }
 0x424   : > { %v1113_v4 = vpop.eup %1112 }
 0x425   : > { %v853_v44 = vrot.slane %v1113_v4, 4  ;;  %864 = vrot.lane.b32.xlu0 %v1113_v4, %s1126_s12  ;;  %858 = vrot.lane.b32.xlu1 %v1113_v4, %s1127_s13 }
 0x427   : > { %v855_v5 = vmul.f32 %v853_v44, %v847_v3 }
 0x429   : > { %857 = vst.msk [vmem:[%s249_s16 - $0x4] sm:$0xf0] %vm856_vm12, %v855_v5 }
 0x497   : > { %v865_v6 = vpop.permute.xlu0 %864  ;;  %v859_v7 = vpop.permute.xlu1 %858 }
 0x498   : > { %v867_v8 = vmul.f32 %v865_v6, %v847_v3  ;;  %v861_v9 = vmul.f32 %v859_v7, %v847_v3 }
 0x49a   : > { %863 = vst.msk [vmem:[%s249_s16] sm:$0xf] %vm862_vm13, %v861_v9 }
 0x49b   : > { %869 = vst.msk [vmem:[%s249_s16] sm:$0xf] %vm868_vm14, %v867_v8 }
 0x49c PF: > { %s16_s21 = sadd.s32 1, %s1120_s21  }
 0x49d   : > { %p13_p4 = scmp.ge.s32.totalorder %s16_s21, 4  }
 0x49f   :  { %15 = sbr.rel (!%p13_p4) target bundleno = 1 (0x1), region = 74 }

</bundles_post_ra>
